<compile_context>
chip_gen: v7x
topology: tpu7x:2x2x1
jax: 0.10.0
libtpu: 0.0.40
codegen_flags: <defaults>
</compile_context>

<pallas_src>
import functools

import jax
import jax.numpy as jnp
from jax.experimental import pallas as pl
from jax.experimental.pallas import tpu as pltpu


_LANE = 128
_MIB = 1024 * 1024


def _round_up(x, m):
    return ((x + m - 1) // m) * m


def _pad2(x, rows, cols):
    r, c = x.shape
    if r == rows and c == cols:
        return x
    return jnp.pad(x, ((0, rows - r), (0, cols - c)))


def _choose_tile(n, max_tile=512):
    """Row / reduction tile: multiple of 128 that divides round_up(n, 128).

    Capped at 512: keeps 2x double-buffered (inc + feat + out) tiles + the
    resident weight block well below v7x's 64 MiB physical VMEM (and below
    v5e's single-store-slot sweet spot).
    """
    npad = _round_up(max(int(n), 1), _LANE)
    for cand in (512, 384, 256, 128):
        if cand <= max_tile and npad % cand == 0:
            return cand
    return _LANE


def _hnhn_step_kernel(inc_ref, feat_ref, scale_ref, w_ref, b_ref,
                      out_ref, acc_ref, *, apply_act):
    """One half-step tile.

      acc   += inc[i, k] @ feat[k]                    (MXU, bf16 in / f32 acc)
      out[i] = act((acc * scale[i]) @ W + b)          (only on last k step)
    """
    k = pl.program_id(1)

    @pl.when(k == 0)
    def _init():
        acc_ref[...] = jnp.zeros_like(acc_ref)

    acc_ref[...] += jnp.dot(
        inc_ref[...],                                # bf16 0/1 incidence (exact)
        feat_ref[...].astype(jnp.bfloat16),
        preferred_element_type=jnp.float32)

    @pl.when(k == pl.num_programs(1) - 1)
    def _finalize():
        agg = acc_ref[...] * scale_ref[...]          # (tm, Din) * (tm, 1)
        y = jnp.dot(agg.astype(jnp.bfloat16),
                    w_ref[...].astype(jnp.bfloat16),
                    preferred_element_type=jnp.float32) + b_ref[...]
        if apply_act:
            y = jnp.maximum(y, 0.0)                  # F.relu
        out_ref[...] = y.astype(out_ref.dtype)


def hnhn_step(inc, feat, scale, w, b, *, apply_act, tm, tk):
    """(inc @ feat) * scale @ w + b (optional ReLU), tiled over rows x reduction.

    All arrays arrive pre-padded: rows multiple of tm, reduction dim multiple
    of tk, feature dims multiple of 128.  `inc` is bf16; everything else f32.
    """
    n_p, m_p = inc.shape
    d_in = feat.shape[1]
    d_out = w.shape[1]
    assert n_p % tm == 0 and m_p % tk == 0
    assert d_in % _LANE == 0 and d_out % _LANE == 0

    grid = (n_p // tm, m_p // tk)

    # Double-buffered working-set estimate -> explicit scoped-VMEM limit
    # (defaults are 16 MiB on v5e / 32 MiB on v6e,v7x; cap below v7x physical).
    work = (2 * (tm * tk * 2 + tk * d_in * 4 + tm * 4 + tm * d_out * 4)
            + d_in * d_out * 4 + d_out * 4 + tm * d_in * 4)
    vmem_limit = int(min(48 * _MIB, max(32 * _MIB, 3 * work)))

    kern = functools.partial(_hnhn_step_kernel, apply_act=apply_act)
    return pl.pallas_call(
        kern,
        out_shape=jax.ShapeDtypeStruct((n_p, d_out), jnp.float32),
        grid_spec=pltpu.PrefetchScalarGridSpec(
            num_scalar_prefetch=0,
            grid=grid,
            in_specs=[
                pl.BlockSpec((tm, tk), lambda i, k: (i, k)),       # incidence tile
                pl.BlockSpec((tk, d_in), lambda i, k: (k, 0)),     # source features
                pl.BlockSpec((tm, 1), lambda i, k: (i, 0)),        # per-row scale
                pl.BlockSpec((d_in, d_out), lambda i, k: (0, 0)),  # weights (resident)
                pl.BlockSpec((1, d_out), lambda i, k: (0, 0)),     # bias   (resident)
            ],
            out_specs=pl.BlockSpec((tm, d_out), lambda i, k: (i, 0)),
            scratch_shapes=[pltpu.VMEM((tm, d_in), jnp.float32)]),
        compiler_params=pltpu.CompilerParams(
            dimension_semantics=("parallel", "arbitrary"),
            vmem_limit_bytes=vmem_limit),
    )(inc, feat, scale, w, b)


def init_params(key, input_vdim, input_edim, hidden_dim, vertex_dim, edge_dim,
                num_layers):
    """Per-layer params, mirroring the dim-wiring of WhatsnetHNHN.__init__."""
    params = []
    for i in range(num_layers):
        if num_layers == 1:
            in_v, out_v, out_e = input_vdim, vertex_dim, edge_dim
        elif i == 0:
            in_v, out_v, out_e = input_vdim, hidden_dim, hidden_dim
        elif i == num_layers - 1:
            in_v, out_v, out_e = hidden_dim, vertex_dim, edge_dim
        else:
            in_v, out_v, out_e = hidden_dim, hidden_dim, hidden_dim
        key, k1, k2, k3, k4 = jax.random.split(key, 5)
        params.append({
            "We": jax.random.normal(k1, (in_v, out_e), jnp.float32) * 0.1,
            "be": jax.random.normal(k2, (1, out_e), jnp.float32) * 0.01,
            "Wv": jax.random.normal(k3, (out_e, out_v), jnp.float32) * 0.1,
            "bv": jax.random.normal(k4, (1, out_v), jnp.float32) * 0.01,
        })
    return params


def whatsnet_hnhn_forward(params, blocks, vfeat, efeat, e_reg_weight,
                          v_reg_sum):
    num_layers = len(params)
    V, E = vfeat.shape[0], efeat.shape[0]
    out_vdim = params[-1]["Wv"].shape[1]
    out_edim = params[-1]["We"].shape[1]

    t_v = _choose_tile(V)
    t_e = _choose_tile(E)
    v_p = _round_up(V, t_v)
    e_p = _round_up(E, t_e)

    # Pad features once to lane-dense (multiple-of-128) slabs; keep them padded
    # through the whole stack and slice only at the end.
    vfeat_p = _pad2(vfeat.astype(jnp.float32), v_p,
                    _round_up(vfeat.shape[1], _LANE))
    efeat_p = _pad2(efeat.astype(jnp.float32), e_p,
                    _round_up(efeat.shape[1], _LANE))

    e_scale_p = _pad2(e_reg_weight.astype(jnp.float32), e_p, 1)
    # Safe reciprocal: isolated vertices (v_reg_sum == 0) must not produce inf.
    inv_v = 1.0 / jnp.maximum(v_reg_sum.astype(jnp.float32), 1e-12)
    v_scale_p = _pad2(inv_v, v_p, 1)

    # Pad + cast the incidence blocks once (0/1 -> bf16 is exact) and reuse.
    blocks_p = []
    for l in range(num_layers):
        blocks_p.append(
            _pad2(blocks[2 * l].astype(jnp.float32), e_p, v_p)
            .astype(jnp.bfloat16))                    # [E, V]  vertex -> edge
        blocks_p.append(
            _pad2(blocks[2 * l + 1].astype(jnp.float32), v_p, e_p)
            .astype(jnp.bfloat16))                    # [V, E]  edge -> vertex

    for l in range(num_layers):
        p = params[l]
        apply_act = (l != num_layers - 1)             # last layer: activation=None

        we = _pad2(p["We"], vfeat_p.shape[1], _round_up(p["We"].shape[1], _LANE))
        be = _pad2(p["be"], 1, we.shape[1])
        efeat_p = hnhn_step(blocks_p[2 * l], vfeat_p, e_scale_p, we, be,
                            apply_act=apply_act, tm=t_e, tk=t_v)

        wv = _pad2(p["Wv"], efeat_p.shape[1], _round_up(p["Wv"].shape[1], _LANE))
        bv = _pad2(p["bv"], 1, wv.shape[1])
        vfeat_p = hnhn_step(blocks_p[2 * l + 1], efeat_p, v_scale_p, wv, bv,
                            apply_act=apply_act, tm=t_v, tk=t_e)

    return vfeat_p[:V, :out_vdim], efeat_p[:E, :out_edim]


def _ref_forward(params, blocks, vfeat, efeat, e_reg_weight, v_reg_sum):
    """Pure-JAX f32 reference for correctness checking."""
    num_layers = len(params)
    inv_v = 1.0 / jnp.maximum(v_reg_sum, 1e-12)
    for l in range(num_layers):
        p = params[l]
        act = (l != num_layers - 1)
        efeat = ((blocks[2 * l] @ vfeat) * e_reg_weight) @ p["We"] + p["be"]
        if act:
            efeat = jnp.maximum(efeat, 0.0)
        vfeat = ((blocks[2 * l + 1] @ efeat) * inv_v) @ p["Wv"] + p["bv"]
        if act:
            vfeat = jnp.maximum(vfeat, 0.0)
    return vfeat, efeat


if __name__ == "__main__":
    key = jax.random.PRNGKey(0)

    # Small problem sizes.
    V, E = 16, 8
    input_vdim, input_edim = 24, 24
    hidden_dim, vertex_dim, edge_dim = 32, 16, 24
    num_layers = 2

    k_h, k_vf, k_ef, k_er, k_vr, k_p = jax.random.split(key, 6)

    # Dense incidence matrix H[V, E] and derived bipartite blocks.
    H = (jax.random.uniform(k_h, (V, E)) < 0.4).astype(jnp.float32)
    blocks = []
    for _ in range(num_layers):
        blocks.append(H.T)   # vertex -> edge block  [E, V]
        blocks.append(H)     # edge -> vertex block  [V, E]

    vfeat = jax.random.normal(k_vf, (V, input_vdim), jnp.float32)
    efeat = jax.random.normal(k_ef, (E, input_edim), jnp.float32)
    e_reg_weight = jax.random.uniform(k_er, (E, 1), jnp.float32,
                                      minval=0.5, maxval=1.5)
    v_reg_sum = jax.random.uniform(k_vr, (V, 1), jnp.float32,
                                   minval=1.0, maxval=3.0)

    params = init_params(k_p, input_vdim, input_edim, hidden_dim, vertex_dim,
                         edge_dim, num_layers)

    fwd = jax.jit(whatsnet_hnhn_forward)
    vout, eout = fwd(params, blocks, vfeat, efeat, e_reg_weight, v_reg_sum)
    jax.block_until_ready((vout, eout))

    assert vout.shape == (V, vertex_dim)
    assert eout.shape == (E, edge_dim)
    assert jnp.all(jnp.isfinite(vout)) and jnp.all(jnp.isfinite(eout))

    # Correctness vs pure-JAX f32 reference (loose tolerance: bf16 MXU inputs).
    vref, eref = _ref_forward(params, blocks, vfeat, efeat, e_reg_weight,
                              v_reg_sum)
    assert jnp.allclose(vout, vref, atol=5e-2, rtol=5e-2), (
        float(jnp.max(jnp.abs(vout - vref))))
    assert jnp.allclose(eout, eref, atol=5e-2, rtol=5e-2), (
        float(jnp.max(jnp.abs(eout - eref))))

    print("KERNEL_OK")
</pallas_src>

<mosaic_0001>
module attributes {stable_mosaic.version = 11 : i64} {
  func.func @_hnhn_step_kernel(%arg0: i32, %arg1: i32, %arg2: memref<128x128xbf16, #tpu.memory_space<vmem>>, %arg3: memref<128x128xf32, #tpu.memory_space<vmem>>, %arg4: memref<128x1xf32, #tpu.memory_space<vmem>>, %arg5: memref<128x128xf32, #tpu.memory_space<vmem>>, %arg6: memref<1x128xf32, #tpu.memory_space<vmem>>, %arg7: memref<128x128xf32, #tpu.memory_space<vmem>>, %arg8: memref<128x128xf32, #tpu.memory_space<vmem>>) attributes {dimension_semantics = [#tpu.dimension_semantics<parallel>, #tpu.dimension_semantics<arbitrary>], iteration_bounds = array<i64: 1, 1>, scalar_prefetch = 0 : i64, scratch_operands = 1 : i64, tpu.core_type = #tpu.core_type<tc>, window_params = [{transform_indices = @transform_0, window_bounds = array<i64: 128, 128>}, {transform_indices = @transform_1, window_bounds = array<i64: 128, 128>}, {transform_indices = @transform_2, window_bounds = array<i64: 128, 1>}, {pipeline_mode = #tpu.pipeline_mode<synchronous>, transform_indices = @transform_3, window_bounds = array<i64: 128, 128>}, {pipeline_mode = #tpu.pipeline_mode<synchronous>, transform_indices = @transform_4, window_bounds = array<i64: 1, 128>}, {transform_indices = @transform_5, window_bounds = array<i64: 128, 128>}]} {
    %c0_i32 = arith.constant 0 : i32
    %0 = arith.cmpi eq, %arg1, %c0_i32 : i32
    %1 = arith.extui %0 : i1 to i32
    %c0_i32_0 = arith.constant 0 : i32
    %2 = arith.cmpi ne, %1, %c0_i32_0 : i32
    scf.if %2 {
      %cst_10 = arith.constant 0.000000e+00 : f32
      %13 = vector.broadcast %cst_10 : f32 to vector<128x128xf32>
      %c0_11 = arith.constant 0 : index
      %c0_12 = arith.constant 0 : index
      %14 = vector.load %arg8[%c0_11, %c0_12] : memref<128x128xf32, #tpu.memory_space<vmem>>, vector<128x128xf32>
      tpu.vector_store %arg8[%c0_11, %c0_12], %13 {strides = array<i32>} : memref<128x128xf32, #tpu.memory_space<vmem>>, vector<128x128xf32>,
    } else {
    }
    %c0 = arith.constant 0 : index
    %c0_1 = arith.constant 0 : index
    %3 = vector.load %arg8[%c0, %c0_1] : memref<128x128xf32, #tpu.memory_space<vmem>>, vector<128x128xf32>
    %c0_2 = arith.constant 0 : index
    %c0_3 = arith.constant 0 : index
    %4 = vector.load %arg2[%c0_2, %c0_3] : memref<128x128xbf16, #tpu.memory_space<vmem>>, vector<128x128xbf16>
    %c0_4 = arith.constant 0 : index
    %c0_5 = arith.constant 0 : index
    %5 = vector.load %arg3[%c0_4, %c0_5] : memref<128x128xf32, #tpu.memory_space<vmem>>, vector<128x128xf32>
    %6 = arith.truncf %5 : vector<128x128xf32> to vector<128x128xbf16>
    %cst = arith.constant dense<0.000000e+00> : vector<128x128xf32>
    %7 = tpu.matmul %4, %6, %cst {dimension_numbers = #tpu.dot_dimension_numbers<[1], [0], [0], [1], [0, 0, 1, 1], [], []>} : vector<128x128xbf16>, vector<128x128xbf16>, vector<128x128xf32> -> vector<128x128xf32>
    %8 = arith.addf %3, %7 : vector<128x128xf32>
    %c0_6 = arith.constant 0 : index
    %c0_7 = arith.constant 0 : index
    %9 = vector.load %arg8[%c0_6, %c0_7] : memref<128x128xf32, #tpu.memory_space<vmem>>, vector<128x128xf32>
    tpu.vector_store %arg8[%c0_6, %c0_7], %8 {strides = array<i32>} : memref<128x128xf32, #tpu.memory_space<vmem>>, vector<128x128xf32>,
    %c0_i32_8 = arith.constant 0 : i32
    %10 = arith.cmpi eq, %arg1, %c0_i32_8 : i32
    %11 = arith.extui %10 : i1 to i32
    %c0_i32_9 = arith.constant 0 : i32
    %12 = arith.cmpi ne, %11, %c0_i32_9 : i32
    scf.if %12 {
      %c0_10 = arith.constant 0 : index
      %c0_11 = arith.constant 0 : index
      %13 = vector.load %arg8[%c0_10, %c0_11] : memref<128x128xf32, #tpu.memory_space<vmem>>, vector<128x128xf32>
      %c0_12 = arith.constant 0 : index
      %c0_13 = arith.constant 0 : index
      %14 = vector.load %arg4[%c0_12, %c0_13] : memref<128x1xf32, #tpu.memory_space<vmem>>, vector<128x1xf32>
      %15 = vector.broadcast %14 : vector<128x1xf32> to vector<128x128xf32>
      %16 = arith.mulf %13, %15 : vector<128x128xf32>
      %17 = arith.truncf %16 : vector<128x128xf32> to vector<128x128xbf16>
      %c0_14 = arith.constant 0 : index
      %c0_15 = arith.constant 0 : index
      %18 = vector.load %arg5[%c0_14, %c0_15] : memref<128x128xf32, #tpu.memory_space<vmem>>, vector<128x128xf32>
      %19 = arith.truncf %18 : vector<128x128xf32> to vector<128x128xbf16>
      %cst_16 = arith.constant dense<0.000000e+00> : vector<128x128xf32>
      %20 = tpu.matmul %17, %19, %cst_16 {dimension_numbers = #tpu.dot_dimension_numbers<[1], [0], [0], [1], [0, 0, 1, 1], [], []>} : vector<128x128xbf16>, vector<128x128xbf16>, vector<128x128xf32> -> vector<128x128xf32>
      %c0_17 = arith.constant 0 : index
      %c0_18 = arith.constant 0 : index
      %21 = vector.load %arg6[%c0_17, %c0_18] : memref<1x128xf32, #tpu.memory_space<vmem>>, vector<1x128xf32>
      %22 = vector.broadcast %21 : vector<1x128xf32> to vector<128x128xf32>
      %23 = arith.addf %20, %22 : vector<128x128xf32>
      %cst_19 = arith.constant 0.000000e+00 : f32
      %24 = vector.broadcast %cst_19 : f32 to vector<128x128xf32>
      %25 = arith.maximumf %23, %24 : vector<128x128xf32>
      %c0_20 = arith.constant 0 : index
      %c0_21 = arith.constant 0 : index
      %26 = vector.load %arg7[%c0_20, %c0_21] : memref<128x128xf32, #tpu.memory_space<vmem>>, vector<128x128xf32>
      tpu.vector_store %arg7[%c0_20, %c0_21], %25 {strides = array<i32>} : memref<128x128xf32, #tpu.memory_space<vmem>>, vector<128x128xf32>,
    } else {
    }
    return
  }
  func.func @transform_0(%arg0: i32, %arg1: i32) -> (i32, i32) {
    %c0_i32 = arith.constant 0 : i32
    return %arg0, %arg1 : i32, i32
  }
  func.func @transform_1(%arg0: i32, %arg1: i32) -> (i32, i32) {
    %c0_i32 = arith.constant 0 : i32
    %c0_i32_0 = arith.constant 0 : i32
    return %arg1, %c0_i32 : i32, i32
  }
  func.func @transform_2(%arg0: i32, %arg1: i32) -> (i32, i32) {
    %c0_i32 = arith.constant 0 : i32
    %c0_i32_0 = arith.constant 0 : i32
    return %arg0, %c0_i32 : i32, i32
  }
  func.func @transform_3(%arg0: i32, %arg1: i32) -> (i32, i32) {
    %c0_i32 = arith.constant 0 : i32
    %c0_i32_0 = arith.constant 0 : i32
    %c0_i32_1 = arith.constant 0 : i32
    return %c0_i32, %c0_i32_0 : i32, i32
  }
  func.func @transform_4(%arg0: i32, %arg1: i32) -> (i32, i32) {
    %c0_i32 = arith.constant 0 : i32
    %c0_i32_0 = arith.constant 0 : i32
    %c0_i32_1 = arith.constant 0 : i32
    return %c0_i32, %c0_i32_0 : i32, i32
  }
  func.func @transform_5(%arg0: i32, %arg1: i32) -> (i32, i32) {
    %c0_i32 = arith.constant 0 : i32
    %c0_i32_0 = arith.constant 0 : i32
    return %arg0, %c0_i32 : i32, i32
  }
}

module attributes {stable_mosaic.version = 11 : i64} {
  func.func @_hnhn_step_kernel(%arg0: i32, %arg1: i32, %arg2: memref<128x128xbf16, #tpu.memory_space<vmem>>, %arg3: memref<128x128xf32, #tpu.memory_space<vmem>>, %arg4: memref<128x1xf32, #tpu.memory_space<vmem>>, %arg5: memref<128x128xf32, #tpu.memory_space<vmem>>, %arg6: memref<1x128xf32, #tpu.memory_space<vmem>>, %arg7: memref<128x128xf32, #tpu.memory_space<vmem>>, %arg8: memref<128x128xf32, #tpu.memory_space<vmem>>) attributes {dimension_semantics = [#tpu.dimension_semantics<parallel>, #tpu.dimension_semantics<arbitrary>], iteration_bounds = array<i64: 1, 1>, scalar_prefetch = 0 : i64, scratch_operands = 1 : i64, tpu.core_type = #tpu.core_type<tc>, window_params = [{transform_indices = @transform_0, window_bounds = array<i64: 128, 128>}, {transform_indices = @transform_1, window_bounds = array<i64: 128, 128>}, {transform_indices = @transform_2, window_bounds = array<i64: 128, 1>}, {pipeline_mode = #tpu.pipeline_mode<synchronous>, transform_indices = @transform_3, window_bounds = array<i64: 128, 128>}, {pipeline_mode = #tpu.pipeline_mode<synchronous>, transform_indices = @transform_4, window_bounds = array<i64: 1, 128>}, {transform_indices = @transform_5, window_bounds = array<i64: 128, 128>}]} {
    %c0_i32 = arith.constant 0 : i32
    %0 = arith.cmpi eq, %arg1, %c0_i32 : i32
    %1 = arith.extui %0 : i1 to i32
    %c0_i32_0 = arith.constant 0 : i32
    %2 = arith.cmpi ne, %1, %c0_i32_0 : i32
    scf.if %2 {
      %cst_10 = arith.constant 0.000000e+00 : f32
      %13 = vector.broadcast %cst_10 : f32 to vector<128x128xf32>
      %c0_11 = arith.constant 0 : index
      %c0_12 = arith.constant 0 : index
      %14 = vector.load %arg8[%c0_11, %c0_12] : memref<128x128xf32, #tpu.memory_space<vmem>>, vector<128x128xf32>
      tpu.vector_store %arg8[%c0_11, %c0_12], %13 {strides = array<i32>} : memref<128x128xf32, #tpu.memory_space<vmem>>, vector<128x128xf32>,
    } else {
    }
    %c0 = arith.constant 0 : index
    %c0_1 = arith.constant 0 : index
    %3 = vector.load %arg8[%c0, %c0_1] : memref<128x128xf32, #tpu.memory_space<vmem>>, vector<128x128xf32>
    %c0_2 = arith.constant 0 : index
    %c0_3 = arith.constant 0 : index
    %4 = vector.load %arg2[%c0_2, %c0_3] : memref<128x128xbf16, #tpu.memory_space<vmem>>, vector<128x128xbf16>
    %c0_4 = arith.constant 0 : index
    %c0_5 = arith.constant 0 : index
    %5 = vector.load %arg3[%c0_4, %c0_5] : memref<128x128xf32, #tpu.memory_space<vmem>>, vector<128x128xf32>
    %6 = arith.truncf %5 : vector<128x128xf32> to vector<128x128xbf16>
    %cst = arith.constant dense<0.000000e+00> : vector<128x128xf32>
    %7 = tpu.matmul %4, %6, %cst {dimension_numbers = #tpu.dot_dimension_numbers<[1], [0], [0], [1], [0, 0, 1, 1], [], []>} : vector<128x128xbf16>, vector<128x128xbf16>, vector<128x128xf32> -> vector<128x128xf32>
    %8 = arith.addf %3, %7 : vector<128x128xf32>
    %c0_6 = arith.constant 0 : index
    %c0_7 = arith.constant 0 : index
    %9 = vector.load %arg8[%c0_6, %c0_7] : memref<128x128xf32, #tpu.memory_space<vmem>>, vector<128x128xf32>
    tpu.vector_store %arg8[%c0_6, %c0_7], %8 {strides = array<i32>} : memref<128x128xf32, #tpu.memory_space<vmem>>, vector<128x128xf32>,
    %c0_i32_8 = arith.constant 0 : i32
    %10 = arith.cmpi eq, %arg1, %c0_i32_8 : i32
    %11 = arith.extui %10 : i1 to i32
    %c0_i32_9 = arith.constant 0 : i32
    %12 = arith.cmpi ne, %11, %c0_i32_9 : i32
    scf.if %12 {
      %c0_10 = arith.constant 0 : index
      %c0_11 = arith.constant 0 : index
      %13 = vector.load %arg8[%c0_10, %c0_11] : memref<128x128xf32, #tpu.memory_space<vmem>>, vector<128x128xf32>
      %c0_12 = arith.constant 0 : index
      %c0_13 = arith.constant 0 : index
      %14 = vector.load %arg4[%c0_12, %c0_13] : memref<128x1xf32, #tpu.memory_space<vmem>>, vector<128x1xf32>
      %15 = vector.broadcast %14 : vector<128x1xf32> to vector<128x128xf32>
      %16 = arith.mulf %13, %15 : vector<128x128xf32>
      %17 = arith.truncf %16 : vector<128x128xf32> to vector<128x128xbf16>
      %c0_14 = arith.constant 0 : index
      %c0_15 = arith.constant 0 : index
      %18 = vector.load %arg5[%c0_14, %c0_15] : memref<128x128xf32, #tpu.memory_space<vmem>>, vector<128x128xf32>
      %19 = arith.truncf %18 : vector<128x128xf32> to vector<128x128xbf16>
      %cst_16 = arith.constant dense<0.000000e+00> : vector<128x128xf32>
      %20 = tpu.matmul %17, %19, %cst_16 {dimension_numbers = #tpu.dot_dimension_numbers<[1], [0], [0], [1], [0, 0, 1, 1], [], []>} : vector<128x128xbf16>, vector<128x128xbf16>, vector<128x128xf32> -> vector<128x128xf32>
      %c0_17 = arith.constant 0 : index
      %c0_18 = arith.constant 0 : index
      %21 = vector.load %arg6[%c0_17, %c0_18] : memref<1x128xf32, #tpu.memory_space<vmem>>, vector<1x128xf32>
      %22 = vector.broadcast %21 : vector<1x128xf32> to vector<128x128xf32>
      %23 = arith.addf %20, %22 : vector<128x128xf32>
      %c0_19 = arith.constant 0 : index
      %c0_20 = arith.constant 0 : index
      %24 = vector.load %arg7[%c0_19, %c0_20] : memref<128x128xf32, #tpu.memory_space<vmem>>, vector<128x128xf32>
      tpu.vector_store %arg7[%c0_19, %c0_20], %23 {strides = array<i32>} : memref<128x128xf32, #tpu.memory_space<vmem>>, vector<128x128xf32>,
    } else {
    }
    return
  }
  func.func @transform_0(%arg0: i32, %arg1: i32) -> (i32, i32) {
    %c0_i32 = arith.constant 0 : i32
    return %arg0, %arg1 : i32, i32
  }
  func.func @transform_1(%arg0: i32, %arg1: i32) -> (i32, i32) {
    %c0_i32 = arith.constant 0 : i32
    %c0_i32_0 = arith.constant 0 : i32
    return %arg1, %c0_i32 : i32, i32
  }
  func.func @transform_2(%arg0: i32, %arg1: i32) -> (i32, i32) {
    %c0_i32 = arith.constant 0 : i32
    %c0_i32_0 = arith.constant 0 : i32
    return %arg0, %c0_i32 : i32, i32
  }
  func.func @transform_3(%arg0: i32, %arg1: i32) -> (i32, i32) {
    %c0_i32 = arith.constant 0 : i32
    %c0_i32_0 = arith.constant 0 : i32
    %c0_i32_1 = arith.constant 0 : i32
    return %c0_i32, %c0_i32_0 : i32, i32
  }
  func.func @transform_4(%arg0: i32, %arg1: i32) -> (i32, i32) {
    %c0_i32 = arith.constant 0 : i32
    %c0_i32_0 = arith.constant 0 : i32
    %c0_i32_1 = arith.constant 0 : i32
    return %c0_i32, %c0_i32_0 : i32, i32
  }
  func.func @transform_5(%arg0: i32, %arg1: i32) -> (i32, i32) {
    %c0_i32 = arith.constant 0 : i32
    %c0_i32_0 = arith.constant 0 : i32
    return %arg0, %c0_i32 : i32, i32
  }
}

</mosaic_0001>

<bundles_post_ra>
// kernel: whatsnet_hnhn_forward.6
= control target key start
LH: loop header
LB: loop body
LE: loop exit
PB: predicated region body
PF: predicated region fallthrough
CT: control target
= control target key end

     0   :  { %v677_v3 = vmov 0   ;;  %s927_s1 = inlined_call_operand.vmem [shape: f32[128,128], index: 1, kind: input, shape index: {}]   ;;  %s928_s0 = inlined_call_operand.vmem [shape: bf16[128,128], index: 0, kind: input, shape index: {}]   ;;  %s929_s2 = inlined_call_operand.vmem [shape: f32[128,1], index: 2, kind: input, shape index: {}]   ;;  %s930_s3 = inlined_call_operand.vmem [shape: f32[128,128], index: 3, kind: input, shape index: {}]   ;;  %s931_s4 = inlined_call_operand.vmem [shape: f32[1,128], index: 4, kind: input, shape index: {}]   ;;  %s932_s5 = inlined_call_operand.vmem [shape: f32[128,128], index: 5, kind: output, shape index: {}]  }
   0x1   :  { %v73_v0 = vld [vmem:[%s927_s1] sm:$0xff]  ;;  %v74_v1 = vld [vmem:[%s927_s1 + $0x8] sm:$0xff]  ;;  %v75_v2 = vld [vmem:[%s927_s1 + $0x10] sm:$0xff]  ;;  %667 = vset.pattern.permute.xlu0 %v677_v3  ;;  %668 = vset.pattern.permute.xlu1 %v677_v3 }
   0x2   :  { %v89_v4 = vpack.c.bf16 %v74_v1, %v73_v0  ;;  %v76_v5 = vld [vmem:[%s927_s1 + $0x18] sm:$0xff]  ;;  %v77_v7 = vld [vmem:[%s927_s1 + $0x20] sm:$0xff]  ;;  %v78_v8 = vld [vmem:[%s927_s1 + $0x28] sm:$0xff] }
   0x3   :  { %v90_v6 = vpack.c.bf16 %v76_v5, %v75_v2  ;;  %v79_v9 = vld [vmem:[%s927_s1 + $0x30] sm:$0xff]  ;;  %v91_v10 = vpack.c.bf16 %v78_v8, %v77_v7  ;;  %v80_v11 = vld [vmem:[%s927_s1 + $0x38] sm:$0xff]  ;;  %v669_v12 = vld [vmem:[%s928_s0] sm:$0xff]  }
   0x4   :  { %602 = vmatprep.subr.bf16.mxu0 %v89_v4  ;;  %618 = vmatprep.mubr.bf16.mxu0 %v669_v12  ;;  %v92_v13 = vpack.c.bf16 %v80_v11, %v79_v9  ;;  %v81_v14 = vld [vmem:[%s927_s1 + $0x40] sm:$0xff]  ;;  %v82_v15 = vld [vmem:[%s927_s1 + $0x48] sm:$0xff]  ;;  %v295_v18 = vld [vmem:[%s929_s2 + $0x10] sm:$0xff] }
   0x5   :  { %603 = vmatpush3.bf16.msra.mxu0 %v89_v4  ;;  %v93_v16 = vpack.c.bf16 %v82_v15, %v81_v14  ;;  %v293_v17 = vld [vmem:[%s929_s2] sm:$0xff]  ;;  %v83_v19 = vld [vmem:[%s927_s1 + $0x50] sm:$0xff]  ;;  %v84_v20 = vld [vmem:[%s927_s1 + $0x58] sm:$0xff]  ;;  %321 = vperm.xlu1 %668, %v295_v18  }
   0x6   :  { %604 = vmatprep.subr.bf16.mxu0 %v90_v6  ;;  %311 = vperm.xlu0 %667, %v293_v17   ;;  %v294_v21 = vld [vmem:[%s929_s2 + $0x8] sm:$0xff]  ;;  %v296_v22 = vld [vmem:[%s929_s2 + $0x18] sm:$0xff]  ;;  %v94_v23 = vpack.c.bf16 %v84_v20, %v83_v19  ;;  %v85_v24 = vld [vmem:[%s927_s1 + $0x60] sm:$0xff] }
   0x7   :  { %v86_v25 = vld [vmem:[%s927_s1 + $0x68] sm:$0xff]  ;;  %v413_v26 = vld [vmem:[%s930_s3] sm:$0xff]  ;;  %v415_v32 = vld [vmem:[%s930_s3 + $0x10] sm:$0xff] }
   0x8   :  { %v297_v27 = vld [vmem:[%s929_s2 + $0x20] sm:$0xff]  ;;  %v298_v28 = vld [vmem:[%s929_s2 + $0x28] sm:$0xff]  ;;  %v95_v31 = vpack.c.bf16 %v86_v25, %v85_v24  ;;  %v416_v33 = vld [vmem:[%s930_s3 + $0x18] sm:$0xff] }
   0x9   :  { %605 = vmatpush3.bf16.msra.mxu0 %v90_v6  ;;  %326 = vperm.xlu1 %668, %v296_v22   ;;  %v414_v29 = vld [vmem:[%s930_s3 + $0x8] sm:$0xff]  ;;  %v87_v34 = vld [vmem:[%s927_s1 + $0x70] sm:$0xff]  ;;  %v88_v35 = vld [vmem:[%s927_s1 + $0x78] sm:$0xff]  ;;  %v430_v36 = vpack.c.bf16 %v416_v33, %v415_v32 }
   0xa   :  { %606 = vmatprep.subr.bf16.mxu0 %v91_v10  ;;  %316 = vperm.xlu0 %667, %v294_v21   ;;  %v429_v30 = vpack.c.bf16 %v414_v29, %v413_v26  ;;  %v299_v37 = vld [vmem:[%s929_s2 + $0x30] sm:$0xff]  ;;  %v300_v38 = vld [vmem:[%s929_s2 + $0x38] sm:$0xff]  ;;  %v96_v39 = vpack.c.bf16 %v88_v35, %v87_v34  ;;  %v417_v40 = vld [vmem:[%s930_s3 + $0x20] sm:$0xff] }
   0xb   :  { %v418_v41 = vld [vmem:[%s930_s3 + $0x28] sm:$0xff]  ;;  %v301_v43 = vld [vmem:[%s929_s2 + $0x40] sm:$0xff]  ;;  %v419_v45 = vld [vmem:[%s930_s3 + $0x30] sm:$0xff] }
   0xc   :  { %634 = vmatprep.subr.bf16.mxu1 %v429_v30  ;;  %v431_v42 = vpack.c.bf16 %v418_v41, %v417_v40  ;;  %v302_v44 = vld [vmem:[%s929_s2 + $0x48] sm:$0xff]  ;;  %v420_v46 = vld [vmem:[%s930_s3 + $0x38] sm:$0xff]  ;;  %v303_v49 = vld [vmem:[%s929_s2 + $0x50] sm:$0xff] }
   0xd   :  { %607 = vmatpush3.bf16.msra.mxu0 %v91_v10  ;;  %336 = vperm.xlu1 %668, %v298_v28   ;;  %v432_v47 = vpack.c.bf16 %v420_v46, %v419_v45  ;;  %v670_v48 = vld [vmem:[%s928_s0 + $0x8] sm:$0xff]   ;;  %v304_v50 = vld [vmem:[%s929_s2 + $0x58] sm:$0xff]  ;;  %v671_v51 = vld [vmem:[%s928_s0 + $0x10] sm:$0xff]  }
   0xe   :  { %608 = vmatprep.subr.bf16.mxu0 %v92_v13  ;;  %331 = vperm.xlu0 %667, %v297_v27   ;;  %v421_v52 = vld [vmem:[%s930_s3 + $0x40] sm:$0xff]  ;;  %v422_v53 = vld [vmem:[%s930_s3 + $0x48] sm:$0xff]  ;;  %v423_v57 = vld [vmem:[%s930_s3 + $0x50] sm:$0xff] }
   0xf   :  { %635 = vmatpush3.bf16.msra.mxu1 %v429_v30  ;;  %v433_v54 = vpack.c.bf16 %v422_v53, %v421_v52  ;;  %v305_v55 = vld [vmem:[%s929_s2 + $0x60] sm:$0xff]  ;;  %v306_v56 = vld [vmem:[%s929_s2 + $0x68] sm:$0xff]  ;;  %v424_v58 = vld [vmem:[%s930_s3 + $0x58] sm:$0xff] }
  0x10   :  { %636 = vmatprep.subr.bf16.mxu1 %v430_v36  ;;  %v434_v59 = vpack.c.bf16 %v424_v58, %v423_v57  ;;  %v672_v60 = vld [vmem:[%s928_s0 + $0x18] sm:$0xff]   ;;  %v307_v61 = vld [vmem:[%s929_s2 + $0x70] sm:$0xff]  ;;  %v673_v63 = vld [vmem:[%s928_s0 + $0x20] sm:$0xff]  }
  0x11   :  { %609 = vmatpush3.bf16.msra.mxu0 %v92_v13  ;;  %346 = vperm.xlu1 %668, %v300_v38   ;;  %v308_v62 = vld [vmem:[%s929_s2 + $0x78] sm:$0xff]  ;;  %v674_v0 = vld [vmem:[%s928_s0 + $0x28] sm:$0xff]   ;;  %v675_v1 = vld [vmem:[%s928_s0 + $0x30] sm:$0xff]  }
  0x12   :  { %610 = vmatprep.subr.bf16.mxu0 %v93_v16  ;;  %341 = vperm.xlu0 %667, %v299_v37   ;;  %v676_v2 = vld [vmem:[%s928_s0 + $0x38] sm:$0xff]   ;;  %v425_v3 = vld [vmem:[%s930_s3 + $0x60] sm:$0xff]  ;;  %v426_v4 = vld [vmem:[%s930_s3 + $0x68] sm:$0xff] }
  0x13   :  { %637 = vmatpush3.bf16.msra.mxu1 %v430_v36  ;;  %v435_v5 = vpack.c.bf16 %v426_v4, %v425_v3  ;;  %v427_v6 = vld [vmem:[%s930_s3 + $0x70] sm:$0xff]  ;;  %v428_v7 = vld [vmem:[%s930_s3 + $0x78] sm:$0xff] }
  0x14   :  { %638 = vmatprep.subr.bf16.mxu1 %v431_v42  ;;  %v436_v8 = vpack.c.bf16 %v428_v7, %v427_v6 }
  0x15   :  { %611 = vmatpush3.bf16.msra.mxu0 %v93_v16  ;;  %356 = vperm.xlu1 %668, %v302_v44  }
  0x16   :  { %612 = vmatprep.subr.bf16.mxu0 %v94_v23  ;;  %351 = vperm.xlu0 %667, %v301_v43  }
  0x17   :  { %639 = vmatpush3.bf16.msra.mxu1 %v431_v42 }
  0x18   :  { %640 = vmatprep.subr.bf16.mxu1 %v432_v47 }
  0x19   :  { %613 = vmatpush3.bf16.msra.mxu0 %v94_v23  ;;  %366 = vperm.xlu1 %668, %v304_v50  }
  0x1a   :  { %614 = vmatprep.subr.bf16.mxu0 %v95_v31  ;;  %361 = vperm.xlu0 %667, %v303_v49  }
  0x1b   :  { %641 = vmatpush3.bf16.msra.mxu1 %v432_v47 }
  0x1c   :  { %642 = vmatprep.subr.bf16.mxu1 %v433_v54 }
  0x1d   :  { %615 = vmatpush3.bf16.msra.mxu0 %v95_v31  ;;  %376 = vperm.xlu1 %668, %v306_v56  }
  0x1e   :  { %616 = vmatprep.subr.bf16.mxu0 %v96_v39  ;;  %371 = vperm.xlu0 %667, %v305_v55  }
  0x1f   :  { %643 = vmatpush3.bf16.msra.mxu1 %v433_v54 }
  0x20   :  { %644 = vmatprep.subr.bf16.mxu1 %v434_v59 }
  0x21   :  { %617 = vmatpush3.bf16.msra.mxu0 %v96_v39  ;;  %386 = vperm.xlu1 %668, %v308_v62  }
  0x22   :  { %381 = vperm.xlu0 %667, %v307_v61  }
  0x23   :  { %645 = vmatpush3.bf16.msra.mxu1 %v434_v59 }
  0x24   :  { %619 = vmatmul.mubr.bf16.vlgmr.msra.gmra.mrb[0].mxu0 %v670_v48  ;;  %646 = vmatprep.subr.bf16.mxu1 %v435_v5 }
  0x25   :  { %622 = vmatprep.mubr.bf16.mxu0 %v671_v51 }
  0x27   :  { %647 = vmatpush3.bf16.msra.mxu1 %v435_v5 }
  0x28   :  { %648 = vmatprep.subr.bf16.mxu1 %v436_v8 }
  0x2b   :  { %649 = vmatpush3.bf16.msra.mxu1 %v436_v8 }
  0x2c   :  { %623 = vmatmul.mubr.bf16.gmra.mrb[4].mxu0 %v672_v60 }
  0x2d   :  { %626 = vmatprep.mubr.bf16.mxu0 %v673_v63 }
  0x34   :  { %627 = vmatmul.mubr.bf16.gmra.mrb[8].mxu0 %v674_v0 }
  0x35   :  { %630 = vmatprep.mubr.bf16.mxu0 %v675_v1  ;;  %v569_v1 = vld [vmem:[%s931_s4] ss:$0 sm:$0xff] }
  0x3c   :  { %631 = vmatmul.mubr.bf16.gmra.mrb[12].mxu0 %v676_v2 }
  0x84   :  { %v322_v10 = vpop.permute.xlu1 %321 }
  0x85   :  { %v312_v9 = vpop.permute.xlu0 %311 }
  0x88   :  { %v327_v12 = vpop.permute.xlu1 %326 }
  0x89   :  { %v317_v11 = vpop.permute.xlu0 %316 }
  0x8c   :  { %v337_v14 = vpop.permute.xlu1 %336 }
  0x8d   :  { %v332_v13 = vpop.permute.xlu0 %331 }
  0x90   :  { %v347_v18 = vpop.permute.xlu1 %346 }
  0x91   :  { %v342_v16 = vpop.permute.xlu0 %341 }
  0x94   :  { %v357_v28 = vpop.permute.xlu1 %356 }
  0x95   :  { %v352_v27 = vpop.permute.xlu0 %351 }
  0x98   :  { %v367_v39 = vpop.permute.xlu1 %366 }
  0x99   :  { %v362_v37 = vpop.permute.xlu0 %361 }
  0x9c   :  { %v377_v48 = vpop.permute.xlu1 %376 }
  0x9d   :  { %v372_v44 = vpop.permute.xlu0 %371 }
  0xa0   :  { %v387_v56 = vpop.permute.xlu1 %386 }
  0xa1   :  { %v382_v54 = vpop.permute.xlu0 %381 }
  0xf7   :  { %v620_v15 = vpop.f32.mrb[0].mxu0 }
  0xf8   :  { %v179_v17 = vpop.f32.mrb[1].mxu0  ;;  %v391_v20 = vmul.f32 %v620_v15, %v322_v10 }
  0xf9   :  { %v621_v19 = vpop.f32.mrb[2].mxu0  ;;  %v389_v23 = vmul.f32 %v312_v9, %v179_v17 }
  0xfa   :  { %v392_v21 = vmul.f32 %v621_v19, %v327_v12  ;;  %v182_v22 = vpop.f32.mrb[3].mxu0 }
  0xfb   :  { %v390_v24 = vmul.f32 %v317_v11, %v182_v22 }
  0xfc   :  { %v406_v25 = vpack.c.bf16 %v392_v21, %v391_v20 }
  0xfd   :  { %v405_v26 = vpack.c.bf16 %v390_v24, %v389_v23 }
  0xff   :  { %v624_v29 = vpop.f32.mrb[4].mxu0  ;;  %650 = vmatprep.mubr.bf16.mxu1 %v405_v26 }
 0x100   :  { %v195_v30 = vpop.f32.mrb[5].mxu0  ;;  %651 = vmatmul.mubr.bf16.vlgmr.msra.gmra.mrb[0].mxu1 %v406_v25  ;;  %v395_v32 = vmul.f32 %v624_v29, %v342_v16 }
 0x101   :  { %v625_v31 = vpop.f32.mrb[6].mxu0  ;;  %v393_v35 = vmul.f32 %v332_v13, %v195_v30 }
 0x102   :  { %v396_v33 = vmul.f32 %v625_v31, %v347_v18  ;;  %v198_v34 = vpop.f32.mrb[7].mxu0 }
 0x103   :  { %v394_v36 = vmul.f32 %v337_v14, %v198_v34 }
 0x104   :  { %v408_v38 = vpack.c.bf16 %v396_v33, %v395_v32 }
 0x105   :  { %v407_v40 = vpack.c.bf16 %v394_v36, %v393_v35 }
 0x107   :  { %v628_v41 = vpop.f32.mrb[8].mxu0  ;;  %654 = vmatprep.mubr.bf16.mxu1 %v407_v40 }
 0x108   :  { %v211_v42 = vpop.f32.mrb[9].mxu0  ;;  %655 = vmatmul.mubr.bf16.gmra.mrb[4].mxu1 %v408_v38  ;;  %v399_v45 = vmul.f32 %v628_v41, %v362_v37 }
 0x109   :  { %v629_v43 = vpop.f32.mrb[10].mxu0  ;;  %v397_v49 = vmul.f32 %v352_v27, %v211_v42 }
 0x10a   :  { %v400_v46 = vmul.f32 %v629_v43, %v367_v39  ;;  %v214_v47 = vpop.f32.mrb[11].mxu0 }
 0x10b   :  { %v398_v50 = vmul.f32 %v357_v28, %v214_v47 }
 0x10c   :  { %v410_v51 = vpack.c.bf16 %v400_v46, %v399_v45 }
 0x10d   :  { %v409_v52 = vpack.c.bf16 %v398_v50, %v397_v49 }
 0x10f   :  { %v632_v53 = vpop.f32.mrb[12].mxu0  ;;  %658 = vmatprep.mubr.bf16.mxu1 %v409_v52 }
 0x110   :  { %v227_v55 = vpop.f32.mrb[13].mxu0  ;;  %659 = vmatmul.mubr.bf16.gmra.mrb[8].mxu1 %v410_v51  ;;  %v403_v58 = vmul.f32 %v632_v53, %v382_v54 }
 0x111   :  { %v633_v57 = vpop.f32.mrb[14].mxu0  ;;  %v401_v61 = vmul.f32 %v372_v44, %v227_v55 }
 0x112   :  { %v404_v59 = vmul.f32 %v633_v57, %v387_v56  ;;  %v230_v60 = vpop.f32.mrb[15].mxu0 }
 0x113   :  { %v402_v62 = vmul.f32 %v377_v48, %v230_v60 }
 0x114   :  { %v412_v63 = vpack.c.bf16 %v404_v59, %v403_v58 }
 0x115   :  { %v411_v0 = vpack.c.bf16 %v402_v62, %v401_v61 }
 0x117   :  { %662 = vmatprep.mubr.bf16.mxu1 %v411_v0 }
 0x118   :  { %663 = vmatmul.mubr.bf16.gmra.mrb[12].mxu1 %v412_v63 }
 0x1d3   :  { %v652_v2 = vpop.f32.mrb[0].mxu1 }
 0x1d4   :  { %v487_v3 = vadd.f32 %v652_v2, %v569_v1  ;;  %v478_v4 = vpop.f32.mrb[1].mxu1 }
 0x1d5   :  { %v479_v5 = vadd.f32 %v569_v1, %v478_v4  ;;  %v653_v6 = vpop.f32.mrb[2].mxu1 }
 0x1d6   :  { %543 = vst [vmem:[%s932_s5 + $0x10] sm:$0xff] %v487_v3  ;;  %v490_v7 = vadd.f32 %v653_v6, %v569_v1  ;;  %v481_v8 = vpop.f32.mrb[3].mxu1 }
 0x1d7   :  { %541 = vst [vmem:[%s932_s5] sm:$0xff] %v479_v5  ;;  %v482_v9 = vadd.f32 %v569_v1, %v481_v8 }
 0x1d8   :  { %544 = vst [vmem:[%s932_s5 + $0x18] sm:$0xff] %v490_v7 }
 0x1d9   :  { %542 = vst [vmem:[%s932_s5 + $0x8] sm:$0xff] %v482_v9 }
 0x1db   :  { %v656_v10 = vpop.f32.mrb[4].mxu1 }
 0x1dc   :  { %v503_v11 = vadd.f32 %v656_v10, %v569_v1  ;;  %v494_v12 = vpop.f32.mrb[5].mxu1 }
 0x1dd   :  { %v495_v13 = vadd.f32 %v569_v1, %v494_v12  ;;  %v657_v14 = vpop.f32.mrb[6].mxu1 }
 0x1de   :  { %547 = vst [vmem:[%s932_s5 + $0x30] sm:$0xff] %v503_v11  ;;  %v506_v15 = vadd.f32 %v657_v14, %v569_v1  ;;  %v497_v16 = vpop.f32.mrb[7].mxu1 }
 0x1df   :  { %545 = vst [vmem:[%s932_s5 + $0x20] sm:$0xff] %v495_v13  ;;  %v498_v17 = vadd.f32 %v569_v1, %v497_v16 }
 0x1e0   :  { %548 = vst [vmem:[%s932_s5 + $0x38] sm:$0xff] %v506_v15 }
 0x1e1   :  { %546 = vst [vmem:[%s932_s5 + $0x28] sm:$0xff] %v498_v17 }
 0x1e3   :  { %v660_v18 = vpop.f32.mrb[8].mxu1 }
 0x1e4   :  { %v519_v19 = vadd.f32 %v660_v18, %v569_v1  ;;  %v510_v20 = vpop.f32.mrb[9].mxu1 }
 0x1e5   :  { %v511_v21 = vadd.f32 %v569_v1, %v510_v20  ;;  %v661_v22 = vpop.f32.mrb[10].mxu1 }
 0x1e6   :  { %551 = vst [vmem:[%s932_s5 + $0x50] sm:$0xff] %v519_v19  ;;  %v522_v23 = vadd.f32 %v661_v22, %v569_v1  ;;  %v513_v24 = vpop.f32.mrb[11].mxu1 }
 0x1e7   :  { %549 = vst [vmem:[%s932_s5 + $0x40] sm:$0xff] %v511_v21  ;;  %v514_v25 = vadd.f32 %v569_v1, %v513_v24 }
 0x1e8   :  { %552 = vst [vmem:[%s932_s5 + $0x58] sm:$0xff] %v522_v23 }
 0x1e9   :  { %550 = vst [vmem:[%s932_s5 + $0x48] sm:$0xff] %v514_v25 }
 0x1eb   :  { %v664_v26 = vpop.f32.mrb[12].mxu1 }
 0x1ec   :  { %v535_v27 = vadd.f32 %v664_v26, %v569_v1  ;;  %v526_v28 = vpop.f32.mrb[13].mxu1 }
 0x1ed   :  { %v527_v29 = vadd.f32 %v569_v1, %v526_v28  ;;  %v665_v30 = vpop.f32.mrb[14].mxu1 }
 0x1ee   :  { %555 = vst [vmem:[%s932_s5 + $0x70] sm:$0xff] %v535_v27  ;;  %v538_v31 = vadd.f32 %v665_v30, %v569_v1  ;;  %v529_v32 = vpop.f32.mrb[15].mxu1 }
 0x1ef   :  { %553 = vst [vmem:[%s932_s5 + $0x60] sm:$0xff] %v527_v29  ;;  %v530_v33 = vadd.f32 %v569_v1, %v529_v32 }
 0x1f0   :  { %556 = vst [vmem:[%s932_s5 + $0x78] sm:$0xff] %v538_v31 }
 0x1f1   :  { %554 = vst [vmem:[%s932_s5 + $0x68] sm:$0xff] %v530_v33 }

// kernel: whatsnet_hnhn_forward.4
= control target key start
LH: loop header
LB: loop body
LE: loop exit
PB: predicated region body
PF: predicated region fallthrough
CT: control target
= control target key end

     0   :  { %v693_v3 = vmov 0   ;;  %s943_s1 = inlined_call_operand.vmem [shape: f32[128,128], index: 1, kind: input, shape index: {}]   ;;  %s944_s0 = inlined_call_operand.vmem [shape: bf16[128,128], index: 0, kind: input, shape index: {}]   ;;  %s945_s2 = inlined_call_operand.vmem [shape: f32[128,1], index: 2, kind: input, shape index: {}]   ;;  %s946_s3 = inlined_call_operand.vmem [shape: f32[128,128], index: 3, kind: input, shape index: {}]   ;;  %s947_s4 = inlined_call_operand.vmem [shape: f32[1,128], index: 4, kind: input, shape index: {}]   ;;  %s948_s5 = inlined_call_operand.vmem [shape: f32[128,128], index: 5, kind: output, shape index: {}]  }
   0x1   :  { %v73_v0 = vld [vmem:[%s943_s1] sm:$0xff]  ;;  %v74_v1 = vld [vmem:[%s943_s1 + $0x8] sm:$0xff]  ;;  %v75_v2 = vld [vmem:[%s943_s1 + $0x10] sm:$0xff]  ;;  %683 = vset.pattern.permute.xlu0 %v693_v3  ;;  %684 = vset.pattern.permute.xlu1 %v693_v3 }
   0x2   :  { %v89_v4 = vpack.c.bf16 %v74_v1, %v73_v0  ;;  %v76_v5 = vld [vmem:[%s943_s1 + $0x18] sm:$0xff]  ;;  %v77_v7 = vld [vmem:[%s943_s1 + $0x20] sm:$0xff]  ;;  %v78_v8 = vld [vmem:[%s943_s1 + $0x28] sm:$0xff] }
   0x3   :  { %v90_v6 = vpack.c.bf16 %v76_v5, %v75_v2  ;;  %v79_v9 = vld [vmem:[%s943_s1 + $0x30] sm:$0xff]  ;;  %v91_v10 = vpack.c.bf16 %v78_v8, %v77_v7  ;;  %v80_v11 = vld [vmem:[%s943_s1 + $0x38] sm:$0xff]  ;;  %v685_v12 = vld [vmem:[%s944_s0] sm:$0xff]  }
   0x4   :  { %618 = vmatprep.subr.bf16.mxu0 %v89_v4  ;;  %634 = vmatprep.mubr.bf16.mxu0 %v685_v12  ;;  %v92_v13 = vpack.c.bf16 %v80_v11, %v79_v9  ;;  %v81_v14 = vld [vmem:[%s943_s1 + $0x40] sm:$0xff]  ;;  %v82_v15 = vld [vmem:[%s943_s1 + $0x48] sm:$0xff]  ;;  %v295_v18 = vld [vmem:[%s945_s2 + $0x10] sm:$0xff] }
   0x5   :  { %619 = vmatpush3.bf16.msra.mxu0 %v89_v4  ;;  %v93_v16 = vpack.c.bf16 %v82_v15, %v81_v14  ;;  %v293_v17 = vld [vmem:[%s945_s2] sm:$0xff]  ;;  %v83_v19 = vld [vmem:[%s943_s1 + $0x50] sm:$0xff]  ;;  %v84_v20 = vld [vmem:[%s943_s1 + $0x58] sm:$0xff]  ;;  %321 = vperm.xlu1 %684, %v295_v18  }
   0x6   :  { %620 = vmatprep.subr.bf16.mxu0 %v90_v6  ;;  %311 = vperm.xlu0 %683, %v293_v17   ;;  %v294_v21 = vld [vmem:[%s945_s2 + $0x8] sm:$0xff]  ;;  %v296_v22 = vld [vmem:[%s945_s2 + $0x18] sm:$0xff]  ;;  %v94_v23 = vpack.c.bf16 %v84_v20, %v83_v19  ;;  %v85_v24 = vld [vmem:[%s943_s1 + $0x60] sm:$0xff] }
   0x7   :  { %v86_v25 = vld [vmem:[%s943_s1 + $0x68] sm:$0xff]  ;;  %v413_v26 = vld [vmem:[%s946_s3] sm:$0xff]  ;;  %v415_v32 = vld [vmem:[%s946_s3 + $0x10] sm:$0xff] }
   0x8   :  { %v297_v27 = vld [vmem:[%s945_s2 + $0x20] sm:$0xff]  ;;  %v298_v28 = vld [vmem:[%s945_s2 + $0x28] sm:$0xff]  ;;  %v95_v31 = vpack.c.bf16 %v86_v25, %v85_v24  ;;  %v416_v33 = vld [vmem:[%s946_s3 + $0x18] sm:$0xff] }
   0x9   :  { %621 = vmatpush3.bf16.msra.mxu0 %v90_v6  ;;  %326 = vperm.xlu1 %684, %v296_v22   ;;  %v414_v29 = vld [vmem:[%s946_s3 + $0x8] sm:$0xff]  ;;  %v87_v34 = vld [vmem:[%s943_s1 + $0x70] sm:$0xff]  ;;  %v88_v35 = vld [vmem:[%s943_s1 + $0x78] sm:$0xff]  ;;  %v430_v36 = vpack.c.bf16 %v416_v33, %v415_v32 }
   0xa   :  { %622 = vmatprep.subr.bf16.mxu0 %v91_v10  ;;  %316 = vperm.xlu0 %683, %v294_v21   ;;  %v429_v30 = vpack.c.bf16 %v414_v29, %v413_v26  ;;  %v299_v37 = vld [vmem:[%s945_s2 + $0x30] sm:$0xff]  ;;  %v300_v38 = vld [vmem:[%s945_s2 + $0x38] sm:$0xff]  ;;  %v96_v39 = vpack.c.bf16 %v88_v35, %v87_v34  ;;  %v417_v40 = vld [vmem:[%s946_s3 + $0x20] sm:$0xff] }
   0xb   :  { %v418_v41 = vld [vmem:[%s946_s3 + $0x28] sm:$0xff]  ;;  %v301_v43 = vld [vmem:[%s945_s2 + $0x40] sm:$0xff]  ;;  %v419_v45 = vld [vmem:[%s946_s3 + $0x30] sm:$0xff] }
   0xc   :  { %650 = vmatprep.subr.bf16.mxu1 %v429_v30  ;;  %v431_v42 = vpack.c.bf16 %v418_v41, %v417_v40  ;;  %v302_v44 = vld [vmem:[%s945_s2 + $0x48] sm:$0xff]  ;;  %v420_v46 = vld [vmem:[%s946_s3 + $0x38] sm:$0xff]  ;;  %v303_v49 = vld [vmem:[%s945_s2 + $0x50] sm:$0xff] }
   0xd   :  { %623 = vmatpush3.bf16.msra.mxu0 %v91_v10  ;;  %336 = vperm.xlu1 %684, %v298_v28   ;;  %v432_v47 = vpack.c.bf16 %v420_v46, %v419_v45  ;;  %v686_v48 = vld [vmem:[%s944_s0 + $0x8] sm:$0xff]   ;;  %v304_v50 = vld [vmem:[%s945_s2 + $0x58] sm:$0xff]  ;;  %v687_v51 = vld [vmem:[%s944_s0 + $0x10] sm:$0xff]  }
   0xe   :  { %624 = vmatprep.subr.bf16.mxu0 %v92_v13  ;;  %331 = vperm.xlu0 %683, %v297_v27   ;;  %v421_v52 = vld [vmem:[%s946_s3 + $0x40] sm:$0xff]  ;;  %v422_v53 = vld [vmem:[%s946_s3 + $0x48] sm:$0xff]  ;;  %v423_v57 = vld [vmem:[%s946_s3 + $0x50] sm:$0xff] }
   0xf   :  { %651 = vmatpush3.bf16.msra.mxu1 %v429_v30  ;;  %v433_v54 = vpack.c.bf16 %v422_v53, %v421_v52  ;;  %v305_v55 = vld [vmem:[%s945_s2 + $0x60] sm:$0xff]  ;;  %v306_v56 = vld [vmem:[%s945_s2 + $0x68] sm:$0xff]  ;;  %v424_v58 = vld [vmem:[%s946_s3 + $0x58] sm:$0xff] }
  0x10   :  { %652 = vmatprep.subr.bf16.mxu1 %v430_v36  ;;  %v434_v59 = vpack.c.bf16 %v424_v58, %v423_v57  ;;  %v688_v60 = vld [vmem:[%s944_s0 + $0x18] sm:$0xff]   ;;  %v307_v61 = vld [vmem:[%s945_s2 + $0x70] sm:$0xff]  ;;  %v689_v63 = vld [vmem:[%s944_s0 + $0x20] sm:$0xff]  }
  0x11   :  { %625 = vmatpush3.bf16.msra.mxu0 %v92_v13  ;;  %346 = vperm.xlu1 %684, %v300_v38   ;;  %v308_v62 = vld [vmem:[%s945_s2 + $0x78] sm:$0xff]  ;;  %v690_v0 = vld [vmem:[%s944_s0 + $0x28] sm:$0xff]   ;;  %v691_v1 = vld [vmem:[%s944_s0 + $0x30] sm:$0xff]  }
  0x12   :  { %626 = vmatprep.subr.bf16.mxu0 %v93_v16  ;;  %341 = vperm.xlu0 %683, %v299_v37   ;;  %v692_v2 = vld [vmem:[%s944_s0 + $0x38] sm:$0xff]   ;;  %v425_v3 = vld [vmem:[%s946_s3 + $0x60] sm:$0xff]  ;;  %v426_v4 = vld [vmem:[%s946_s3 + $0x68] sm:$0xff] }
  0x13   :  { %653 = vmatpush3.bf16.msra.mxu1 %v430_v36  ;;  %v435_v5 = vpack.c.bf16 %v426_v4, %v425_v3  ;;  %v427_v6 = vld [vmem:[%s946_s3 + $0x70] sm:$0xff]  ;;  %v428_v7 = vld [vmem:[%s946_s3 + $0x78] sm:$0xff] }
  0x14   :  { %654 = vmatprep.subr.bf16.mxu1 %v431_v42  ;;  %v436_v8 = vpack.c.bf16 %v428_v7, %v427_v6 }
  0x15   :  { %627 = vmatpush3.bf16.msra.mxu0 %v93_v16  ;;  %356 = vperm.xlu1 %684, %v302_v44  }
  0x16   :  { %628 = vmatprep.subr.bf16.mxu0 %v94_v23  ;;  %351 = vperm.xlu0 %683, %v301_v43  }
  0x17   :  { %655 = vmatpush3.bf16.msra.mxu1 %v431_v42 }
  0x18   :  { %656 = vmatprep.subr.bf16.mxu1 %v432_v47 }
  0x19   :  { %629 = vmatpush3.bf16.msra.mxu0 %v94_v23  ;;  %366 = vperm.xlu1 %684, %v304_v50  }
  0x1a   :  { %630 = vmatprep.subr.bf16.mxu0 %v95_v31  ;;  %361 = vperm.xlu0 %683, %v303_v49  }
  0x1b   :  { %657 = vmatpush3.bf16.msra.mxu1 %v432_v47 }
  0x1c   :  { %658 = vmatprep.subr.bf16.mxu1 %v433_v54 }
  0x1d   :  { %631 = vmatpush3.bf16.msra.mxu0 %v95_v31  ;;  %376 = vperm.xlu1 %684, %v306_v56  }
  0x1e   :  { %632 = vmatprep.subr.bf16.mxu0 %v96_v39  ;;  %371 = vperm.xlu0 %683, %v305_v55  }
  0x1f   :  { %659 = vmatpush3.bf16.msra.mxu1 %v433_v54 }
  0x20   :  { %660 = vmatprep.subr.bf16.mxu1 %v434_v59 }
  0x21   :  { %633 = vmatpush3.bf16.msra.mxu0 %v96_v39  ;;  %386 = vperm.xlu1 %684, %v308_v62  }
  0x22   :  { %381 = vperm.xlu0 %683, %v307_v61  }
  0x23   :  { %661 = vmatpush3.bf16.msra.mxu1 %v434_v59 }
  0x24   :  { %635 = vmatmul.mubr.bf16.vlgmr.msra.gmra.mrb[0].mxu0 %v686_v48  ;;  %662 = vmatprep.subr.bf16.mxu1 %v435_v5 }
  0x25   :  { %638 = vmatprep.mubr.bf16.mxu0 %v687_v51 }
  0x27   :  { %663 = vmatpush3.bf16.msra.mxu1 %v435_v5 }
  0x28   :  { %664 = vmatprep.subr.bf16.mxu1 %v436_v8 }
  0x2b   :  { %665 = vmatpush3.bf16.msra.mxu1 %v436_v8 }
  0x2c   :  { %639 = vmatmul.mubr.bf16.gmra.mrb[4].mxu0 %v688_v60 }
  0x2d   :  { %642 = vmatprep.mubr.bf16.mxu0 %v689_v63 }
  0x34   :  { %643 = vmatmul.mubr.bf16.gmra.mrb[8].mxu0 %v690_v0 }
  0x35   :  { %646 = vmatprep.mubr.bf16.mxu0 %v691_v1  ;;  %v585_v1 = vld [vmem:[%s947_s4] ss:$0 sm:$0xff] }
  0x3c   :  { %647 = vmatmul.mubr.bf16.gmra.mrb[12].mxu0 %v692_v2 }
  0x84   :  { %v322_v10 = vpop.permute.xlu1 %321 }
  0x85   :  { %v312_v9 = vpop.permute.xlu0 %311 }
  0x88   :  { %v327_v12 = vpop.permute.xlu1 %326 }
  0x89   :  { %v317_v11 = vpop.permute.xlu0 %316 }
  0x8c   :  { %v337_v14 = vpop.permute.xlu1 %336 }
  0x8d   :  { %v332_v13 = vpop.permute.xlu0 %331 }
  0x90   :  { %v347_v18 = vpop.permute.xlu1 %346 }
  0x91   :  { %v342_v16 = vpop.permute.xlu0 %341 }
  0x94   :  { %v357_v28 = vpop.permute.xlu1 %356 }
  0x95   :  { %v352_v27 = vpop.permute.xlu0 %351 }
  0x98   :  { %v367_v39 = vpop.permute.xlu1 %366 }
  0x99   :  { %v362_v37 = vpop.permute.xlu0 %361 }
  0x9c   :  { %v377_v48 = vpop.permute.xlu1 %376 }
  0x9d   :  { %v372_v44 = vpop.permute.xlu0 %371 }
  0xa0   :  { %v387_v56 = vpop.permute.xlu1 %386 }
  0xa1   :  { %v382_v54 = vpop.permute.xlu0 %381 }
  0xf7   :  { %v636_v15 = vpop.f32.mrb[0].mxu0 }
  0xf8   :  { %v179_v17 = vpop.f32.mrb[1].mxu0  ;;  %v391_v20 = vmul.f32 %v636_v15, %v322_v10 }
  0xf9   :  { %v637_v19 = vpop.f32.mrb[2].mxu0  ;;  %v389_v23 = vmul.f32 %v312_v9, %v179_v17 }
  0xfa   :  { %v392_v21 = vmul.f32 %v637_v19, %v327_v12  ;;  %v182_v22 = vpop.f32.mrb[3].mxu0 }
  0xfb   :  { %v390_v24 = vmul.f32 %v317_v11, %v182_v22 }
  0xfc   :  { %v406_v25 = vpack.c.bf16 %v392_v21, %v391_v20 }
  0xfd   :  { %v405_v26 = vpack.c.bf16 %v390_v24, %v389_v23 }
  0xff   :  { %v640_v29 = vpop.f32.mrb[4].mxu0  ;;  %666 = vmatprep.mubr.bf16.mxu1 %v405_v26 }
 0x100   :  { %v195_v30 = vpop.f32.mrb[5].mxu0  ;;  %667 = vmatmul.mubr.bf16.vlgmr.msra.gmra.mrb[0].mxu1 %v406_v25  ;;  %v395_v32 = vmul.f32 %v640_v29, %v342_v16 }
 0x101   :  { %v641_v31 = vpop.f32.mrb[6].mxu0  ;;  %v393_v35 = vmul.f32 %v332_v13, %v195_v30 }
 0x102   :  { %v396_v33 = vmul.f32 %v641_v31, %v347_v18  ;;  %v198_v34 = vpop.f32.mrb[7].mxu0 }
 0x103   :  { %v394_v36 = vmul.f32 %v337_v14, %v198_v34 }
 0x104   :  { %v408_v38 = vpack.c.bf16 %v396_v33, %v395_v32 }
 0x105   :  { %v407_v40 = vpack.c.bf16 %v394_v36, %v393_v35 }
 0x107   :  { %v644_v41 = vpop.f32.mrb[8].mxu0  ;;  %670 = vmatprep.mubr.bf16.mxu1 %v407_v40 }
 0x108   :  { %v211_v42 = vpop.f32.mrb[9].mxu0  ;;  %671 = vmatmul.mubr.bf16.gmra.mrb[4].mxu1 %v408_v38  ;;  %v399_v45 = vmul.f32 %v644_v41, %v362_v37 }
 0x109   :  { %v645_v43 = vpop.f32.mrb[10].mxu0  ;;  %v397_v49 = vmul.f32 %v352_v27, %v211_v42 }
 0x10a   :  { %v400_v46 = vmul.f32 %v645_v43, %v367_v39  ;;  %v214_v47 = vpop.f32.mrb[11].mxu0 }
 0x10b   :  { %v398_v50 = vmul.f32 %v357_v28, %v214_v47 }
 0x10c   :  { %v410_v51 = vpack.c.bf16 %v400_v46, %v399_v45 }
 0x10d   :  { %v409_v52 = vpack.c.bf16 %v398_v50, %v397_v49 }
 0x10f   :  { %v648_v53 = vpop.f32.mrb[12].mxu0  ;;  %674 = vmatprep.mubr.bf16.mxu1 %v409_v52 }
 0x110   :  { %v227_v55 = vpop.f32.mrb[13].mxu0  ;;  %675 = vmatmul.mubr.bf16.gmra.mrb[8].mxu1 %v410_v51  ;;  %v403_v58 = vmul.f32 %v648_v53, %v382_v54 }
 0x111   :  { %v649_v57 = vpop.f32.mrb[14].mxu0  ;;  %v401_v61 = vmul.f32 %v372_v44, %v227_v55 }
 0x112   :  { %v404_v59 = vmul.f32 %v649_v57, %v387_v56  ;;  %v230_v60 = vpop.f32.mrb[15].mxu0 }
 0x113   :  { %v402_v62 = vmul.f32 %v377_v48, %v230_v60 }
 0x114   :  { %v412_v63 = vpack.c.bf16 %v404_v59, %v403_v58 }
 0x115   :  { %v411_v0 = vpack.c.bf16 %v402_v62, %v401_v61 }
 0x117   :  { %678 = vmatprep.mubr.bf16.mxu1 %v411_v0 }
 0x118   :  { %679 = vmatmul.mubr.bf16.gmra.mrb[12].mxu1 %v412_v63 }
 0x1d3   :  { %v668_v2 = vpop.f32.mrb[0].mxu1 }
 0x1d4   :  { %v487_v3 = vadd.f32 %v668_v2, %v585_v1  ;;  %v478_v4 = vpop.f32.mrb[1].mxu1 }
 0x1d5   :  { %v479_v5 = vadd.f32 %v585_v1, %v478_v4  ;;  %v669_v6 = vpop.f32.mrb[2].mxu1 }
 0x1d6   :  { %v543_v7 = vmax.f32 %v487_v3, 0.0  ;;  %v490_v8 = vadd.f32 %v669_v6, %v585_v1  ;;  %v481_v9 = vpop.f32.mrb[3].mxu1 }
 0x1d7   :  { %v541_v10 = vmax.f32 %v479_v5, 0.0  ;;  %v482_v11 = vadd.f32 %v585_v1, %v481_v9 }
 0x1d8   :  { %559 = vst [vmem:[%s948_s5 + $0x10] sm:$0xff] %v543_v7  ;;  %v544_v12 = vmax.f32 %v490_v8, 0.0 }
 0x1d9   :  { %557 = vst [vmem:[%s948_s5] sm:$0xff] %v541_v10  ;;  %v542_v13 = vmax.f32 %v482_v11, 0.0 }
 0x1da   :  { %560 = vst [vmem:[%s948_s5 + $0x18] sm:$0xff] %v544_v12 }
 0x1db   :  { %558 = vst [vmem:[%s948_s5 + $0x8] sm:$0xff] %v542_v13  ;;  %v672_v14 = vpop.f32.mrb[4].mxu1 }
 0x1dc   :  { %v503_v15 = vadd.f32 %v672_v14, %v585_v1  ;;  %v494_v16 = vpop.f32.mrb[5].mxu1 }
 0x1dd   :  { %v495_v17 = vadd.f32 %v585_v1, %v494_v16  ;;  %v673_v18 = vpop.f32.mrb[6].mxu1 }
 0x1de   :  { %v547_v19 = vmax.f32 %v503_v15, 0.0  ;;  %v506_v20 = vadd.f32 %v673_v18, %v585_v1  ;;  %v497_v21 = vpop.f32.mrb[7].mxu1 }
 0x1df   :  { %v545_v22 = vmax.f32 %v495_v17, 0.0  ;;  %v498_v23 = vadd.f32 %v585_v1, %v497_v21 }
 0x1e0   :  { %563 = vst [vmem:[%s948_s5 + $0x30] sm:$0xff] %v547_v19  ;;  %v548_v24 = vmax.f32 %v506_v20, 0.0 }
 0x1e1   :  { %561 = vst [vmem:[%s948_s5 + $0x20] sm:$0xff] %v545_v22  ;;  %v546_v25 = vmax.f32 %v498_v23, 0.0 }
 0x1e2   :  { %564 = vst [vmem:[%s948_s5 + $0x38] sm:$0xff] %v548_v24 }
 0x1e3   :  { %562 = vst [vmem:[%s948_s5 + $0x28] sm:$0xff] %v546_v25  ;;  %v676_v26 = vpop.f32.mrb[8].mxu1 }
 0x1e4   :  { %v519_v27 = vadd.f32 %v676_v26, %v585_v1  ;;  %v510_v28 = vpop.f32.mrb[9].mxu1 }
 0x1e5   :  { %v511_v29 = vadd.f32 %v585_v1, %v510_v28  ;;  %v677_v30 = vpop.f32.mrb[10].mxu1 }
 0x1e6   :  { %v551_v31 = vmax.f32 %v519_v27, 0.0  ;;  %v522_v32 = vadd.f32 %v677_v30, %v585_v1  ;;  %v513_v33 = vpop.f32.mrb[11].mxu1 }
 0x1e7   :  { %v549_v34 = vmax.f32 %v511_v29, 0.0  ;;  %v514_v35 = vadd.f32 %v585_v1, %v513_v33 }
 0x1e8   :  { %567 = vst [vmem:[%s948_s5 + $0x50] sm:$0xff] %v551_v31  ;;  %v552_v36 = vmax.f32 %v522_v32, 0.0 }
 0x1e9   :  { %565 = vst [vmem:[%s948_s5 + $0x40] sm:$0xff] %v549_v34  ;;  %v550_v37 = vmax.f32 %v514_v35, 0.0 }
 0x1ea   :  { %568 = vst [vmem:[%s948_s5 + $0x58] sm:$0xff] %v552_v36 }
 0x1eb   :  { %566 = vst [vmem:[%s948_s5 + $0x48] sm:$0xff] %v550_v37  ;;  %v680_v38 = vpop.f32.mrb[12].mxu1 }
 0x1ec   :  { %v535_v39 = vadd.f32 %v680_v38, %v585_v1  ;;  %v526_v40 = vpop.f32.mrb[13].mxu1 }
 0x1ed   :  { %v527_v41 = vadd.f32 %v585_v1, %v526_v40  ;;  %v681_v42 = vpop.f32.mrb[14].mxu1 }
 0x1ee   :  { %v555_v43 = vmax.f32 %v535_v39, 0.0  ;;  %v538_v44 = vadd.f32 %v681_v42, %v585_v1  ;;  %v529_v45 = vpop.f32.mrb[15].mxu1 }
 0x1ef   :  { %v553_v46 = vmax.f32 %v527_v41, 0.0  ;;  %v530_v47 = vadd.f32 %v585_v1, %v529_v45 }
 0x1f0   :  { %571 = vst [vmem:[%s948_s5 + $0x70] sm:$0xff] %v555_v43  ;;  %v556_v48 = vmax.f32 %v538_v44, 0.0 }
 0x1f1   :  { %569 = vst [vmem:[%s948_s5 + $0x60] sm:$0xff] %v553_v46  ;;  %v554_v49 = vmax.f32 %v530_v47, 0.0 }
 0x1f2   :  { %572 = vst [vmem:[%s948_s5 + $0x78] sm:$0xff] %v556_v48 }
 0x1f3   :  { %570 = vst [vmem:[%s948_s5 + $0x68] sm:$0xff] %v554_v49 }

</bundles_post_ra>
